<compile_context>
chip_gen: v7x
topology: tpu7x:2x2x1
jax: 0.10.0
libtpu: 0.0.40
codegen_flags: <defaults>
</compile_context>

<pallas_src>
import functools

import jax
import jax.numpy as jnp
from jax.experimental import pallas as pl
from jax.experimental.pallas import tpu as pltpu

LANE = 128


# --------------------------------------------------------------------------
# Kernels
# --------------------------------------------------------------------------
def se_kernel(x_ref, w1t_ref, b1_ref, w2t_ref, b2_ref, o_ref, *, inv_hw):
    """Single-pass SE: x_ref/o_ref are (bn, C, HW) slabs, weights are resident.

    x_ref   : (bn, C, HW) activations
    w1t_ref : (C, Cr)     fc1 weight (1x1 conv), pre-transposed
    b1_ref  : (1, Cr)
    w2t_ref : (Cr, C)     fc2 weight (1x1 conv), pre-transposed
    b2_ref  : (1, C)
    """
    # AdaptiveAvgPool2d(1): global mean over spatial, accumulated in f32.
    pooled = jnp.sum(x_ref[...].astype(jnp.float32), axis=-1) * inv_hw          # (bn, C)

    # fc1 (1x1 conv == matmul) + ReLU.
    s1 = jnp.dot(pooled, w1t_ref[...].astype(jnp.float32),
                 preferred_element_type=jnp.float32)
    s1 = jnp.maximum(s1 + b1_ref[...].astype(jnp.float32), 0.0)                 # (bn, Cr)

    # fc2 + sigmoid.
    s2 = jnp.dot(s1, w2t_ref[...].astype(jnp.float32),
                 preferred_element_type=jnp.float32) + b2_ref[...].astype(jnp.float32)
    gate = jax.nn.sigmoid(s2)                                                    # (bn, C)

    # Channel-wise scale in the output dtype: for bf16 inputs this keeps the
    # dominant elementwise pass in bf16 (v6e/v7x bf16 VALU); for f32 it is the
    # same f32 multiply as before.  Re-reads x_ref so no second full-slab f32
    # copy is kept live across the pool->fc chain.
    o_ref[...] = x_ref[...] * gate.astype(o_ref.dtype)[:, :, None]


def _gate_kernel(x_ref, w1t_ref, b1_ref, w2t_ref, b2_ref, g_ref, acc_ref,
                 *, inv_hw, hw, masked):
    """Fallback pass 1: accumulate pooled sum over spatial tiles, finalize gate.

    Grid: (batch, spatial-tiles); spatial axis is a reduction ("arbitrary").
    x_ref : (1, C, hw_tile); g_ref : (1, C, 1); acc_ref : VMEM (1, C) f32.
    """
    j = pl.program_id(1)
    hw_tile = x_ref.shape[-1]

    @pl.when(j == 0)
    def _():
        acc_ref[...] = jnp.zeros_like(acc_ref)

    x = x_ref[...].astype(jnp.float32)
    if masked:
        # Last spatial tile may extend past HW; its padded tail is undefined.
        lane = jax.lax.broadcasted_iota(jnp.int32, x_ref.shape, 2)
        x = jnp.where(lane < (hw - j * hw_tile), x, 0.0)
    acc_ref[...] += jnp.sum(x, axis=-1)

    @pl.when(j == pl.num_programs(1) - 1)
    def _():
        pooled = acc_ref[...] * inv_hw                                           # (1, C)
        s1 = jnp.dot(pooled, w1t_ref[...].astype(jnp.float32),
                     preferred_element_type=jnp.float32)
        s1 = jnp.maximum(s1 + b1_ref[...].astype(jnp.float32), 0.0)
        s2 = jnp.dot(s1, w2t_ref[...].astype(jnp.float32),
                     preferred_element_type=jnp.float32) + b2_ref[...].astype(jnp.float32)
        g_ref[...] = jax.nn.sigmoid(s2)[:, :, None].astype(g_ref.dtype)


def _scale_kernel(x_ref, g_ref, o_ref):
    """Fallback pass 2: o = x * gate, gate block (1, C, 1) broadcasts over HW."""
    o_ref[...] = x_ref[...] * g_ref[...].astype(o_ref.dtype)


# --------------------------------------------------------------------------
# Generation-aware sizing helpers
# --------------------------------------------------------------------------
def _tpu_budget():
    """Returns (slab budget for double-buffered in+out, vmem_limit cap, #cores)."""
    cap = 128 << 20
    try:
        info = pltpu.get_tpu_info()
        cap = int(getattr(info, "vmem_capacity_bytes", cap))
    except Exception:
        pass
    if cap <= (64 << 20):
        # v7x-class: 64 MiB per TensorCore, 2 TCs/chip share the grid.
        return 44 << 20, 56 << 20, 2
    # v5e / v6e: 128 MiB VMEM, single TensorCore.
    return 96 << 20, 112 << 20, 1


def _choose_block_batch(n, slab_bytes, budget_bytes, num_cores):
    """Largest divisor of n whose double-buffered in+out slabs fit the budget.

    On multi-core chips prefer enough grid steps for every core to stay busy
    and pipelined; on single-core chips just take the biggest tile (the grid is
    a serial loop, extra steps only add per-step overhead).
    Returns None when even bn=1 does not fit (caller uses the two-pass plan).
    """
    divisors = [d for d in range(1, n + 1) if n % d == 0]
    fitting = [d for d in divisors if 4 * d * slab_bytes <= budget_bytes]
    if not fitting:
        return None
    if num_cores <= 1:
        return fitting[-1]
    tiers = (
        [d for d in fitting if n // d >= 2 * num_cores and (n // d) % num_cores == 0],
        [d for d in fitting if n // d >= num_cores and (n // d) % num_cores == 0],
        [d for d in fitting if n // d >= num_cores],
        fitting,
    )
    for tier in tiers:
        if tier:
            return tier[-1]
    return fitting[-1]


def _choose_hw_tile(hw, c, itemsize, bytes_budget, n_buffers):
    """Largest lane-aligned spatial tile whose buffers fit the byte budget."""
    if hw <= LANE:
        return hw
    tile = (bytes_budget // max(1, n_buffers * c * itemsize)) // LANE * LANE
    tile = max(LANE, int(tile))
    return hw if tile >= hw else tile


# --------------------------------------------------------------------------
# Wrappers
# --------------------------------------------------------------------------
def _se_one_pass(x_flat, w1t, b1r, w2t, b2r, hw, bn, slab_bytes, limit_cap):
    N, C, _ = x_flat.shape
    Cr = w1t.shape[1]
    weight_bytes = 4 * (w1t.size + w2t.size + b1r.size + b2r.size)
    footprint = 4 * bn * slab_bytes + weight_bytes + (4 << 20)
    vmem_limit = int(min(max(footprint, 32 << 20), limit_cap))

    kernel = functools.partial(se_kernel, inv_hw=1.0 / hw)
    return pl.pallas_call(
        kernel,
        out_shape=jax.ShapeDtypeStruct((N, C, hw), x_flat.dtype),
        grid_spec=pltpu.PrefetchScalarGridSpec(
            num_scalar_prefetch=0,
            grid=(N // bn,),
            in_specs=[
                # Last two dims equal the full (C, HW) extents -> legal even
                # when HW is not a multiple of 128; no pad / slice needed.
                pl.BlockSpec((bn, C, hw), lambda n: (n, 0, 0)),
                pl.BlockSpec((C, Cr), lambda n: (0, 0)),   # resident weights
                pl.BlockSpec((1, Cr), lambda n: (0, 0)),
                pl.BlockSpec((Cr, C), lambda n: (0, 0)),
                pl.BlockSpec((1, C), lambda n: (0, 0)),
            ],
            out_specs=pl.BlockSpec((bn, C, hw), lambda n: (n, 0, 0)),
        ),
        compiler_params=pltpu.CompilerParams(
            dimension_semantics=("parallel",),
            vmem_limit_bytes=vmem_limit,
        ),
    )(x_flat, w1t, b1r, w2t, b2r)


def _se_two_pass(x_flat, w1t, b1r, w2t, b2r, hw, budget, limit_cap):
    """Oversized-slab fallback: gate pass (spatial reduction) + tiled scale pass."""
    N, C, _ = x_flat.shape
    Cr = w1t.shape[1]
    itemsize = jnp.dtype(x_flat.dtype).itemsize
    weight_bytes = 4 * (w1t.size + w2t.size + b1r.size + b2r.size)

    # ---- pass 1: gates (N, C, 1) -------------------------------------------
    hw_tile1 = _choose_hw_tile(hw, C, itemsize, budget, n_buffers=2)
    n_hw1 = pl.cdiv(hw, hw_tile1)
    masked1 = (hw % hw_tile1) != 0
    fp1 = 2 * C * hw_tile1 * itemsize + weight_bytes + (4 << 20)
    limit1 = int(min(max(fp1, 32 << 20), limit_cap))

    gate_kernel = functools.partial(_gate_kernel, inv_hw=1.0 / hw, hw=hw, masked=masked1)
    gates = pl.pallas_call(
        gate_kernel,
        out_shape=jax.ShapeDtypeStruct((N, C, 1), jnp.float32),
        grid_spec=pltpu.PrefetchScalarGridSpec(
            num_scalar_prefetch=0,
            grid=(N, n_hw1),
            in_specs=[
                pl.BlockSpec((1, C, hw_tile1), lambda i, j: (i, 0, j)),
                pl.BlockSpec((C, Cr), lambda i, j: (0, 0)),
                pl.BlockSpec((1, Cr), lambda i, j: (0, 0)),
                pl.BlockSpec((Cr, C), lambda i, j: (0, 0)),
                pl.BlockSpec((1, C), lambda i, j: (0, 0)),
            ],
            out_specs=pl.BlockSpec((1, C, 1), lambda i, j: (i, 0, 0)),
            scratch_shapes=[pltpu.VMEM((1, C), jnp.float32)],
        ),
        compiler_params=pltpu.CompilerParams(
            dimension_semantics=("parallel", "arbitrary"),
            vmem_limit_bytes=limit1,
        ),
    )(x_flat, w1t, b1r, w2t, b2r)

    # ---- pass 2: tiled channel-wise scale -----------------------------------
    hw_tile2 = _choose_hw_tile(hw, C, itemsize, budget, n_buffers=4)
    n_hw2 = pl.cdiv(hw, hw_tile2)
    fp2 = 4 * C * hw_tile2 * itemsize + (4 << 20)
    limit2 = int(min(max(fp2, 32 << 20), limit_cap))

    return pl.pallas_call(
        _scale_kernel,
        out_shape=jax.ShapeDtypeStruct((N, C, hw), x_flat.dtype),
        grid_spec=pltpu.PrefetchScalarGridSpec(
            num_scalar_prefetch=0,
            grid=(N, n_hw2),
            in_specs=[
                pl.BlockSpec((1, C, hw_tile2), lambda i, j: (i, 0, j)),
                pl.BlockSpec((1, C, 1), lambda i, j: (i, 0, 0)),
            ],
            out_specs=pl.BlockSpec((1, C, hw_tile2), lambda i, j: (i, 0, j)),
        ),
        compiler_params=pltpu.CompilerParams(
            dimension_semantics=("parallel", "parallel"),
            vmem_limit_bytes=limit2,
        ),
    )(x_flat, gates)


def se_module(x, w1, b1, w2, b2, *, vmem_budget_bytes=None):
    """SEModule forward. x: (N, C, H, W); w1: (Cr, C); b1: (Cr,); w2: (C, Cr); b2: (C,)."""
    N, C, H, W = x.shape
    Cr = w1.shape[0]
    HW = H * W

    x_flat = x.reshape(N, C, HW)
    # Pre-transpose the 1x1-conv weights so the kernel runs (bn,C)@(C,Cr) etc.
    w1t = jnp.transpose(w1)          # (C, Cr)
    w2t = jnp.transpose(w2)          # (Cr, C)
    b1r = b1.reshape(1, Cr)
    b2r = b2.reshape(1, C)

    budget, limit_cap, num_cores = _tpu_budget()
    if vmem_budget_bytes is not None:      # test / tuning override
        budget = int(vmem_budget_bytes)

    itemsize = jnp.dtype(x.dtype).itemsize
    slab_bytes = C * HW * itemsize
    bn = _choose_block_batch(N, slab_bytes, budget, num_cores)

    if bn is None:
        out_flat = _se_two_pass(x_flat, w1t, b1r, w2t, b2r, HW, budget, limit_cap)
    else:
        out_flat = _se_one_pass(x_flat, w1t, b1r, w2t, b2r, HW, bn, slab_bytes, limit_cap)
    return out_flat.reshape(N, C, H, W)


# --------------------------------------------------------------------------
# Reference + test
# --------------------------------------------------------------------------
def se_reference(x, w1, b1, w2, b2):
    xf = x.astype(jnp.float32)
    pooled = jnp.mean(xf, axis=(2, 3), keepdims=True)                    # (N, C, 1, 1)
    s1 = jnp.einsum("rc,ncij->nrij", w1.astype(jnp.float32), pooled) + b1[None, :, None, None]
    s1 = jnp.maximum(s1, 0.0)
    s2 = jnp.einsum("cr,nrij->ncij", w2.astype(jnp.float32), s1) + b2[None, :, None, None]
    return (xf * jax.nn.sigmoid(s2)).astype(x.dtype)


if __name__ == "__main__":
    key = jax.random.PRNGKey(0)
    N, C, reduction = 2, 4, 2
    Cr = C // reduction

    kx1, kx2, k1, k2, k3, k4 = jax.random.split(key, 6)
    # Conv2d 1x1 weights flattened to 2D.
    w1 = jax.random.normal(k1, (Cr, C), dtype=jnp.float32) * 0.5   # fc1.weight
    b1 = jax.random.normal(k2, (Cr,), dtype=jnp.float32) * 0.1     # fc1.bias
    w2 = jax.random.normal(k3, (C, Cr), dtype=jnp.float32) * 0.5   # fc2.weight
    b2 = jax.random.normal(k4, (C,), dtype=jnp.float32) * 0.1      # fc2.bias

    # 1) Fast path, lane-aligned spatial (16*16 = 256).
    x1 = jax.random.normal(kx1, (N, C, 16, 16), dtype=jnp.float32)
    out1 = jax.block_until_ready(se_module(x1, w1, b1, w2, b2))
    ref1 = se_reference(x1, w1, b1, w2, b2)
    assert out1.shape == x1.shape
    assert jnp.allclose(out1, ref1, atol=1e-5, rtol=1e-5), "mismatch (one-pass, aligned)"

    # 2) Fast path, non-128-multiple spatial (12*12 = 144): full-extent block,
    #    no wrapper-side pad/slice.
    x2 = jax.random.normal(kx2, (N, C, 12, 12), dtype=jnp.float32)
    out2 = jax.block_until_ready(se_module(x2, w1, b1, w2, b2))
    ref2 = se_reference(x2, w1, b1, w2, b2)
    assert jnp.allclose(out2, ref2, atol=1e-5, rtol=1e-5), "mismatch (one-pass, unaligned)"

    # 3) Two-pass fallback forced via a tiny budget: exercises spatial-tile
    #    accumulation, tail masking and the tiled scale pass.
    out3 = jax.block_until_ready(se_module(x2, w1, b1, w2, b2, vmem_budget_bytes=4096))
    assert jnp.allclose(out3, ref2, atol=1e-5, rtol=1e-5), "mismatch (two-pass fallback)"

    print("KERNEL_OK")
</pallas_src>

<mosaic_0001>
module attributes {stable_mosaic.version = 11 : i64} {
  func.func @se_kernel(%arg0: i32, %arg1: memref<2x4x256xf32, #tpu.memory_space<vmem>>, %arg2: memref<4x2xf32, #tpu.memory_space<vmem>>, %arg3: memref<1x2xf32, #tpu.memory_space<vmem>>, %arg4: memref<2x4xf32, #tpu.memory_space<vmem>>, %arg5: memref<1x4xf32, #tpu.memory_space<vmem>>, %arg6: memref<2x4x256xf32, #tpu.memory_space<vmem>>) attributes {dimension_semantics = [#tpu.dimension_semantics<parallel>], iteration_bounds = array<i64: 1>, scalar_prefetch = 0 : i64, scratch_operands = 0 : i64, tpu.core_type = #tpu.core_type<tc>, window_params = [{transform_indices = @transform_0, window_bounds = array<i64: 2, 4, 256>}, {pipeline_mode = #tpu.pipeline_mode<synchronous>, transform_indices = @transform_1, window_bounds = array<i64: 4, 2>}, {pipeline_mode = #tpu.pipeline_mode<synchronous>, transform_indices = @transform_2, window_bounds = array<i64: 1, 2>}, {pipeline_mode = #tpu.pipeline_mode<synchronous>, transform_indices = @transform_3, window_bounds = array<i64: 2, 4>}, {pipeline_mode = #tpu.pipeline_mode<synchronous>, transform_indices = @transform_4, window_bounds = array<i64: 1, 4>}, {transform_indices = @transform_5, window_bounds = array<i64: 2, 4, 256>}]} {
    %c0 = arith.constant 0 : index
    %c0_0 = arith.constant 0 : index
    %c0_1 = arith.constant 0 : index
    %0 = vector.load %arg1[%c0, %c0_0, %c0_1] : memref<2x4x256xf32, #tpu.memory_space<vmem>>, vector<2x4x256xf32>
    %cst = arith.constant dense<0.000000e+00> : vector<2x4xf32>
    %1 = vector.multi_reduction <add>, %0, %cst [2] : vector<2x4x256xf32> to vector<2x4xf32>
    %cst_2 = arith.constant 3.906250e-03 : f32
    %2 = vector.broadcast %cst_2 : f32 to vector<2x4xf32>
    %3 = arith.mulf %1, %2 : vector<2x4xf32>
    %c0_3 = arith.constant 0 : index
    %c0_4 = arith.constant 0 : index
    %4 = vector.load %arg2[%c0_3, %c0_4] : memref<4x2xf32, #tpu.memory_space<vmem>>, vector<4x2xf32>
    %cst_5 = arith.constant dense<0.000000e+00> : vector<2x2xf32>
    %5 = tpu.matmul %3, %4, %cst_5 {dimension_numbers = #tpu.dot_dimension_numbers<[1], [0], [0], [1], [0, 0, 1, 1], [], []>} : vector<2x4xf32>, vector<4x2xf32>, vector<2x2xf32> -> vector<2x2xf32>
    %c0_6 = arith.constant 0 : index
    %c0_7 = arith.constant 0 : index
    %6 = vector.load %arg3[%c0_6, %c0_7] : memref<1x2xf32, #tpu.memory_space<vmem>>, vector<1x2xf32>
    %7 = vector.broadcast %6 : vector<1x2xf32> to vector<2x2xf32>
    %8 = arith.addf %5, %7 : vector<2x2xf32>
    %cst_8 = arith.constant 0.000000e+00 : f32
    %9 = vector.broadcast %cst_8 : f32 to vector<2x2xf32>
    %10 = arith.maximumf %8, %9 : vector<2x2xf32>
    %c0_9 = arith.constant 0 : index
    %c0_10 = arith.constant 0 : index
    %11 = vector.load %arg4[%c0_9, %c0_10] : memref<2x4xf32, #tpu.memory_space<vmem>>, vector<2x4xf32>
    %cst_11 = arith.constant dense<0.000000e+00> : vector<2x4xf32>
    %12 = tpu.matmul %10, %11, %cst_11 {dimension_numbers = #tpu.dot_dimension_numbers<[1], [0], [0], [1], [0, 0, 1, 1], [], []>} : vector<2x2xf32>, vector<2x4xf32>, vector<2x4xf32> -> vector<2x4xf32>
    %c0_12 = arith.constant 0 : index
    %c0_13 = arith.constant 0 : index
    %13 = vector.load %arg5[%c0_12, %c0_13] : memref<1x4xf32, #tpu.memory_space<vmem>>, vector<1x4xf32>
    %14 = vector.broadcast %13 : vector<1x4xf32> to vector<2x4xf32>
    %15 = arith.addf %12, %14 : vector<2x4xf32>
    %16 = arith.negf %15 : vector<2x4xf32>
    %17 = math.exp %16 : vector<2x4xf32>
    %cst_14 = arith.constant 1.000000e+00 : f32
    %18 = vector.broadcast %cst_14 : f32 to vector<2x4xf32>
    %19 = arith.addf %18, %17 : vector<2x4xf32>
    %20 = arith.divf %18, %19 : vector<2x4xf32>
    %c0_15 = arith.constant 0 : index
    %c0_16 = arith.constant 0 : index
    %c0_17 = arith.constant 0 : index
    %21 = vector.load %arg1[%c0_15, %c0_16, %c0_17] : memref<2x4x256xf32, #tpu.memory_space<vmem>>, vector<2x4x256xf32>
    %22 = vector.shape_cast %20 : vector<2x4xf32> to vector<2x4x1xf32>
    %23 = vector.broadcast %22 : vector<2x4x1xf32> to vector<2x4x256xf32>
    %24 = arith.mulf %21, %23 : vector<2x4x256xf32>
    %c0_18 = arith.constant 0 : index
    %c0_19 = arith.constant 0 : index
    %c0_20 = arith.constant 0 : index
    %25 = vector.load %arg6[%c0_18, %c0_19, %c0_20] : memref<2x4x256xf32, #tpu.memory_space<vmem>>, vector<2x4x256xf32>
    tpu.vector_store %arg6[%c0_18, %c0_19, %c0_20], %24 {strides = array<i32>} : memref<2x4x256xf32, #tpu.memory_space<vmem>>, vector<2x4x256xf32>,
    return
  }
  func.func @transform_0(%arg0: i32) -> (i32, i32, i32) {
    %c0_i32 = arith.constant 0 : i32
    %c0_i32_0 = arith.constant 0 : i32
    %c0_i32_1 = arith.constant 0 : i32
    return %arg0, %c0_i32, %c0_i32_0 : i32, i32, i32
  }
  func.func @transform_1(%arg0: i32) -> (i32, i32) {
    %c0_i32 = arith.constant 0 : i32
    %c0_i32_0 = arith.constant 0 : i32
    %c0_i32_1 = arith.constant 0 : i32
    return %c0_i32, %c0_i32_0 : i32, i32
  }
  func.func @transform_2(%arg0: i32) -> (i32, i32) {
    %c0_i32 = arith.constant 0 : i32
    %c0_i32_0 = arith.constant 0 : i32
    %c0_i32_1 = arith.constant 0 : i32
    return %c0_i32, %c0_i32_0 : i32, i32
  }
  func.func @transform_3(%arg0: i32) -> (i32, i32) {
    %c0_i32 = arith.constant 0 : i32
    %c0_i32_0 = arith.constant 0 : i32
    %c0_i32_1 = arith.constant 0 : i32
    return %c0_i32, %c0_i32_0 : i32, i32
  }
  func.func @transform_4(%arg0: i32) -> (i32, i32) {
    %c0_i32 = arith.constant 0 : i32
    %c0_i32_0 = arith.constant 0 : i32
    %c0_i32_1 = arith.constant 0 : i32
    return %c0_i32, %c0_i32_0 : i32, i32
  }
  func.func @transform_5(%arg0: i32) -> (i32, i32, i32) {
    %c0_i32 = arith.constant 0 : i32
    %c0_i32_0 = arith.constant 0 : i32
    %c0_i32_1 = arith.constant 0 : i32
    return %arg0, %c0_i32, %c0_i32_0 : i32, i32, i32
  }
}

</mosaic_0001>

<bundles_post_ra>
// kernel: tpu_custom_call.1
= control target key start
LH: loop header
LB: loop body
LE: loop exit
PB: predicated region body
PF: predicated region fallthrough
CT: control target
= control target key end

     0   :  { %10 = vsyncpa [#allocation3], 0  ;;  %s478_s0 = inlined_call_operand.hbm [shape: f32[2,4,256], index: 0, kind: input, shape index: {}]   ;;  %s479_s1 = inlined_call_operand.vmem [shape: f32[4,2], index: 1, kind: input, shape index: {}]   ;;  %s480_s2 = inlined_call_operand.vmem [shape: f32[1,2], index: 2, kind: input, shape index: {}]   ;;  %s481_s3 = inlined_call_operand.vmem [shape: f32[2,4], index: 3, kind: input, shape index: {}]   ;;  %s482_s4 = inlined_call_operand.vmem [shape: f32[1,4], index: 4, kind: input, shape index: {}]   ;;  %s483_s5 = inlined_call_operand.hbm [shape: f32[2,4,256], index: 5, kind: output, shape index: {}]  }
   0x1   :  { %11 = vsyncpa [#allocation4], 0  ;;  %s382_s18 = smov [#allocation2]   ;;  %s334_s22 = scalar_lea.hbm %s478_s0, 256 }
   0x2   :  { %s17_s19 = sshll.u32 %s382_s18, 4  ;;  %p335_p0 = scmp.ne.s32.totalorder %s478_s0, %s334_s22  ;;  %s18_s19 = int_to_ptr.vmem [resolvable:$true] %s17_s19 }
   0x3   :  { %p338_p1 = scmp.lt.u32.totalorder %s334_s22, %s478_s0 }
   0x5   :  { %p340_p2 = pnand %p338_p1, %p335_p0 }
   0x7   :  { %343 = shalt.err (!%p340_p2)
}
   0x8   :  { %s344_s27 = scalar_lea.vmem %s18_s19, 256  ;;  %p349_p4 = scmp.lt.s32.totalorder %s18_s19, %s18_s19 }
   0x9   :  { %p345_p3 = scmp.ne.s32.totalorder %s18_s19, %s344_s27  ;;  %p350_p5 = scmp.lt.s32.totalorder %s344_s27, %s344_s27 }
   0xb   :  { %p351_p6 = por %p350_p5, %p349_p4 }
   0xd   :  { %p352_p7 = pnand %p351_p6, %p345_p3 }
   0xf   :  { %355 = shalt.err (!%p352_p7)
}
  0x10   :  { %s383_s28 = smov 128   ;;  %s384_s29 = smov 8  }
  0x11   :  { %23 = dma.hbm_to_vmem [thread:$0]  %s478_s0, 256, %s18_s19, [#allocation3], %s383_s28, %s383_s28, %s384_s29  }
  0x12   :  { %378 = dma.done.wait [#allocation3], 256  }
  0x13   :  { %379 = vsyncadd [#allocation3], 4294967040  ;;  %vm43_vm0 = vcmask 1043456   ;;  %v434_v0 = vld [vmem:[#allocation2] sm:$0xff]  ;;  %v436_v1 = vld [vmem:[#allocation2 + $0x8] sm:$0xff]  ;;  %v385_v11 = vmov 0.0   ;;  %v66_v12 = vlaneseq }
  0x14   :  { %v39_v2 = vcombine.high %v434_v0, %v434_v0  ;;  %v44_v3 = vsel %vm43_vm0, %v434_v0, 0.0  ;;  %v40_v4 = vcombine.high %v436_v1, %v436_v1  ;;  %v49_v6 = vsel %vm43_vm0, %v436_v1, 0.0  ;;  %v56_v10 = vld [vmem:[%s479_s1] sm:$0xf]  ;;  %311 = vmatprep.subr.mxu0 %v385_v11  ;;  %316 = vmatprep.subr.mxu1 %v385_v11 }
  0x15   :  { %vm386_vm1 = vmmov 0   ;;  %312 = vmatpush3.msk.msra.mxu0 %vm43_vm0, %v56_v10  ;;  %v67_v13 = vand.u32 127, %v66_v12  ;;  %v69_v14 = vshrl.u32 %v66_v12, 7  ;;  %vm76_vm2 = vcmask 1041409   ;;  %v155_v23 = vld [vmem:[%s481_s3] sm:$0x3] }
  0x16   :  { %v45_v5 = vsel %vm43_vm0, %v39_v2, 0.0  ;;  %v50_v7 = vsel %vm43_vm0, %v40_v4, 0.0  ;;  %313 = vmatprep.mubr.msk.f32.mxu0 %vm386_vm1, %v385_v11  ;;  %318 = vmatprep.mubr.msk.f32.mxu1 %vm386_vm1, %v385_v11  ;;  %vm78_vm3 = vcmask 31744   ;;  %vm167_vm4 = vcmask 1041408   ;;  %v300_v24 = vld [vmem:[%s480_s2] ss:$0 sm:$0xff] }
  0x17   :  { %v46_v8 = vadd.f32 %v45_v5, %v44_v3  ;;  %v51_v9 = vadd.f32 %v50_v7, %v49_v6  ;;  %v70_v16 = vsub.s32 %v67_v13, %v69_v14  ;;  %317 = vmatpush3.msk.msra.mxu1 %vm167_vm4, %v155_v23  ;;  %vm163_vm5 = vcmask 15360   ;;  %v303_v29 = vld [vmem:[%s482_s4] ss:$0 sm:$0xff]  ;;  %s388_s2 = smov [#allocation5]  }
  0x18   :  { %v249_v36 = vsub.s32 0, %v69_v14  ;;  %v256_v39 = vsub.s32 1, %v69_v14  ;;  %v387_v41 = vmov 839922192   ;;  %s288_s3 = sshll.u32 %s388_s2, 4  ;;  %s289_s3 = int_to_ptr.vmem [resolvable:$true] %s288_s3 }
  0x19   :  { %47 = vadd.xlane.f32.xlu0 %v46_v8  ;;  %v264_v42 = vunpack.c.l.s4 %v387_v41  ;;  %s356_s4 = scalar_lea.vmem %s289_s3, 256  ;;  %p361_p9 = scmp.lt.s32.totalorder %s289_s3, %s289_s3 }
  0x1a   :  { %p357_p8 = scmp.ne.s32.totalorder %s289_s3, %s356_s4  ;;  %p362_p10 = scmp.lt.s32.totalorder %s356_s4, %s356_s4 }
  0x1b   :  { %v265_v43 = vunpack.c.0.s8 %v264_v42 }
  0x1c   :  { %p363_p11 = por %p362_p10, %p361_p9 }
  0x1d   :  { %52 = vadd.xlane.f32.xlu0 %v51_v9  ;;  %v268_v44 = vsub.s32 %v265_v43, %v69_v14 }
  0x1e   :  { %p364_p12 = pnand %p363_p11, %p357_p8 }
  0xa6   :  { %v48_v15 = vpop.xlane.xlu0 %47 }
  0xa7   :  { %v54_v17 = vmul.f32 0.00390625, %v48_v15 }
  0xa9   :  { %v71_v20 = vrot.slane %v54_v17, %v70_v16 }
  0xaa   :  { %v53_v18 = vpop.xlane.xlu0 %52 }
  0xab   :  { %v55_v19 = vmul.f32 0.00390625, %v53_v18 }
  0xad   :  { %v75_v21 = vrot.slane %v55_v19, %v70_v16 }
  0xaf   :  { %v77_v22 = vsel %vm76_vm2, %v75_v21, %v71_v20 }
  0xb0   :  { %314 = vmatmul.mubr.msk.f32.vlgmr.msra.gmra.mrb[0].mxu0 %vm78_vm3, %v77_v22 }
 0x183   :  { %v150_v25 = vpop.f32.mrb[0].mxu0 }
 0x184   :  { %v151_v26 = vadd.f32 %v300_v24, %v150_v25  ;;  %v315_v27 = vpop.f32.mrb[1].mxu0 }
 0x186   :  { %v154_v28 = vmax.f32 %v151_v26, 0.0 }
 0x188   :  { %319 = vmatmul.mubr.msk.f32.vlgmr.msra.gmra.mrb[0].mxu1 %vm163_vm5, %v154_v28 }
 0x25b   :  { %v237_v30 = vpop.f32.mrb[0].mxu1 }
 0x25c   :  { %v238_v31 = vadd.f32 %v303_v29, %v237_v30  ;;  %v320_v32 = vpop.f32.mrb[1].mxu1 }
 0x25e   :  { %v306_v33 = vmul.f32 -1.442695, %v238_v31 }
 0x260   :  { %330 = vpow2.f32 %v306_v33 }
 0x26a   :  { %v331_v34 = vpop.eup %330 }
 0x26b   :  { %v244_v35 = vadd.f32 1.0, %v331_v34 }
 0x26d   :  { %332 = vrcp.f32 %v244_v35 }
 0x277   :  { %v333_v37 = vpop.eup %332 }
 0x278   :  { %v250_v38 = vrot.slane %v333_v37, %v249_v36  ;;  %v257_v40 = vrot.slane %v333_v37, %v256_v39 }
 0x27a   :  { %252 = vbcast.lane.b32.xlu1 %v250_v38, 256 }
 0x27e   :  { %259 = vbcast.lane.b32.xlu1 %v257_v40, 256 }
 0x2ec   :  { %v253_v45 = vpop.permute.xlu1 %252 }
 0x2ed   :  { %v269_v46 = vrot.slane %v253_v45, %v268_v44 }
 0x2ef   :  { %v279_v47 = vmul.f32 %v269_v46, %v434_v0 }
 0x2f0   :  { %v260_v48 = vpop.permute.xlu1 %259 }
 0x2f1   :  { %281 = vst [vmem:[#allocation5] sm:$0xff] %v279_v47  ;;  %v276_v49 = vrot.slane %v260_v48, %v268_v44 }
 0x2f3   :  { %v280_v50 = vmul.f32 %v276_v49, %v436_v1 }
 0x2f5   :  { %282 = vst [vmem:[#allocation5 + $0x8] sm:$0xff] %v280_v50 }
 0x2f6   :  { %367 = shalt.err (!%p364_p12)
}
 0x2f7   :  { %s368_s15 = scalar_lea.hbm %s483_s5, 256 }
 0x2f8   :  { %p369_p13 = scmp.ne.s32.totalorder %s483_s5, %s368_s15  ;;  %p372_p0 = scmp.lt.u32.totalorder %s368_s15, %s483_s5 }
 0x2fa   :  { %p374_p1 = pnand %p372_p0, %p369_p13 }
 0x2fc   :  { %377 = shalt.err (!%p374_p1)
}
 0x2fd   :  { %294 = dma.vmem_to_hbm [thread:$0]  %s289_s3, 256, %s483_s5, [#allocation4], %s383_s28, %s383_s28, %s384_s29  }
 0x2fe   :  { %380 = dma.done.wait [#allocation4], 256  }
 0x2ff   :  { %381 = vsyncadd [#allocation4], 4294967040 }
 0x300   :  { %298 = vsyncpa [#allocation3], 1 }
 0x301   :  { %299 = vsyncpa [#allocation4], 1 }

</bundles_post_ra>
